<compile_context>
chip_gen: v5e
topology: v5e:2x2
jax: 0.10.0
libtpu: 0.0.40
codegen_flags: <defaults>
</compile_context>

<pallas_src>
import functools

import jax
import jax.numpy as jnp
from jax.experimental import pallas as pl
from jax.experimental.pallas import tpu as pltpu


def _ffn_kernel(x_ref, w13_ref, w2_ref, o_ref, acc_ref):
    """One (token tile, hidden chunk) step of the SwiGLU FFN.

    x_ref  : [TM, D]        token tile (resident across the hidden axis)
    w13_ref: [2, D, TH]     stacked chunk of (w1.T, w3.T)
    w2_ref : [TH, D]        chunk of w2.T
    o_ref  : [TM, D]        output tile (written on the last hidden chunk)
    acc_ref: [TM, D] f32    accumulator scratch
    """
    k = pl.program_id(1)

    @pl.when(k == 0)
    def _():
        acc_ref[...] = jnp.zeros_like(acc_ref)

    x = x_ref[...]
    # Plain [M, K] x [K, N] matmuls sharing the same LHS; f32 accumulation.
    h1 = jnp.dot(x, w13_ref[0], preferred_element_type=jnp.float32)
    h3 = jnp.dot(x, w13_ref[1], preferred_element_type=jnp.float32)
    # SwiGLU gate in f32 (sigmoid runs on the EUP slot).
    g = (h1 * jax.nn.sigmoid(h1)) * h3
    # Partial down-projection: [TM, TH] x [TH, D] -> [TM, D].
    acc_ref[...] += jnp.dot(g.astype(w2_ref.dtype), w2_ref[...],
                            preferred_element_type=jnp.float32)

    @pl.when(k == pl.num_programs(1) - 1)
    def _():
        o_ref[...] = acc_ref[...].astype(o_ref.dtype)


def _round_up(a, b):
    return (a + b - 1) // b * b


def prepare_ffn_weights(w1, w2, w3):
    """One-time HBM relayout (do at weight-load time, NOT per call).

    w1, w3: [H, D] (PyTorch nn.Linear [out, in] layout); w2: [D, H].
    Returns (w13t [2, D, H], w2t [H, D]) so every in-kernel dot is a plain
    [M, K] x [K, N] with no transposed-RHS contraction.
    """
    assert w1.shape == w3.shape and w2.shape == (w1.shape[1], w1.shape[0])
    w13t = jnp.stack([w1.T, w3.T])      # [2, D, H]
    w2t = w2.T                          # [H, D]
    return w13t, w2t


def _vmem_budget_bytes():
    """Usable VMEM budget per generation: leave headroom for compiler scratch."""
    try:
        cap = int(pltpu.get_tpu_info().vmem_capacity_bytes)
    except Exception:
        cap = 64 * 1024 * 1024          # conservative (v7x-sized) fallback
    # v7x (64 MiB) -> 48 MiB; v5e/v6e (128 MiB) -> 112 MiB.
    return max(16 * 1024 * 1024, min(cap - 16 * 1024 * 1024, 112 * 1024 * 1024))


def _step_vmem_bytes(tm, th, D, act_b, w_b):
    return (2 * tm * D * act_b          # x tile (double-buffered)
            + 2 * tm * D * act_b        # out tile
            + tm * D * 4                # f32 accumulator scratch
            + 2 * 2 * th * D * w_b      # stacked w1/w3 chunk (double-buffered)
            + 2 * th * D * w_b)         # w2 chunk (double-buffered)


def _auto_tiles(M, D, H, act_b, w_b, budget):
    """Pick (TM, TH): maximize the token tile (the weight-restream lever) and
    amortize per-step overhead, under the VMEM budget."""
    m_cap = max(8, _round_up(M, 8))
    th_cands = [c for c in (512, 256, 128) if c <= H and H % c == 0] or [H]
    tm_cands = sorted({min(t, m_cap) for t in
                       (2048, 1536, 1024, 768, 512, 384, 256, 128, 64, 32, 16, 8)},
                      reverse=True)
    best, best_cost = None, float("inf")
    for th in th_cands:
        n_h = max(1, H // th)
        for tm in tm_cands:
            if _step_vmem_bytes(tm, th, D, act_b, w_b) > budget:
                continue
            m_tiles = pl.cdiv(M, tm)
            steps = m_tiles * n_h
            # Rough cost [us]: weight restream over ~1.2 GB/ms HBM + 0.35us/step.
            cost = (m_tiles * 3 * H * D * w_b) / 1.2e6 + steps * 0.35
            if cost < best_cost:
                best, best_cost = (tm, th), cost
    if best is None:                     # minuscule budget fallback
        best = (min(128, m_cap), th_cands[-1])
    return best


@functools.partial(jax.jit, static_argnames=("tm", "th", "vmem_limit"))
def _feed_forward_impl(x, w13t, w2t, *, tm, th, vmem_limit):
    B, S, D = x.shape
    H = w13t.shape[2]
    M = B * S
    x2 = x.reshape(M, D)

    grid = (pl.cdiv(M, tm), max(1, H // th))

    w_bytes_once = 3 * H * D * w13t.dtype.itemsize
    cost = pl.CostEstimate(
        flops=6 * M * H * D,                               # three matmuls
        transcendentals=M * H,                             # sigmoid
        bytes_accessed=w_bytes_once * grid[0] + 2 * M * D * x.dtype.itemsize,
    )

    out2 = pl.pallas_call(
        _ffn_kernel,
        out_shape=jax.ShapeDtypeStruct((M, D), x.dtype),
        grid_spec=pltpu.PrefetchScalarGridSpec(
            num_scalar_prefetch=0,
            grid=grid,
            in_specs=[
                pl.BlockSpec((tm, D), lambda i, k: (i, 0)),        # x (resident over k)
                pl.BlockSpec((2, D, th), lambda i, k: (0, 0, k)),  # stacked w1/w3
                pl.BlockSpec((th, D), lambda i, k: (k, 0)),        # w2 chunk
            ],
            out_specs=pl.BlockSpec((tm, D), lambda i, k: (i, 0)),
            scratch_shapes=[pltpu.VMEM((tm, D), jnp.float32)],
        ),
        compiler_params=pltpu.CompilerParams(
            dimension_semantics=("parallel", "arbitrary"),   # M sharded across TCs
            vmem_limit_bytes=int(vmem_limit),
        ),
        cost_estimate=cost,
    )(x2, w13t, w2t)

    return out2.reshape(B, S, D)


def feed_forward(x, w13t, w2t, *, tm=None, th=None):
    """SwiGLU FFN.  x: [B, S, D]; (w13t, w2t) come from prepare_ffn_weights."""
    B, S, D = x.shape
    two, d_in, H = w13t.shape
    assert two == 2 and d_in == D and w2t.shape == (H, D)
    M = B * S

    budget = _vmem_budget_bytes()
    auto_tm, auto_th = _auto_tiles(M, D, H,
                                   jnp.dtype(x.dtype).itemsize,
                                   jnp.dtype(w13t.dtype).itemsize,
                                   budget)
    tm_eff = min(tm, max(8, _round_up(M, 8))) if tm is not None else auto_tm
    th_eff = min(th, H) if th is not None else auto_th
    assert th_eff == H or H % th_eff == 0, "hidden tile must divide hidden dim"

    return _feed_forward_impl(x, w13t, w2t, tm=tm_eff, th=th_eff,
                              vmem_limit=budget)


def _llama_hidden_dim(dim, hidden_dim, multiple_of, ffn_dim_multiplier):
    hidden_dim = int(2 * hidden_dim / 3)
    if ffn_dim_multiplier is not None:
        hidden_dim = int(ffn_dim_multiplier * hidden_dim)
    hidden_dim = multiple_of * ((hidden_dim + multiple_of - 1) // multiple_of)
    return hidden_dim


def _reference(x, w1, w2, w3):
    h1 = jnp.einsum("bsd,hd->bsh", x, w1)
    h3 = jnp.einsum("bsd,hd->bsh", x, w3)
    g = jax.nn.silu(h1) * h3
    return jnp.einsum("bsh,dh->bsd", g, w2)


if __name__ == "__main__":
    # Small, module-consistent shapes.
    dim = 256
    multiple_of = 256
    ffn_dim_multiplier = None
    hidden_dim = _llama_hidden_dim(dim, 4 * dim, multiple_of, ffn_dim_multiplier)
    # -> int(2*1024/3)=682, rounded up to multiple of 256 -> 768

    batch, seq = 2, 8
    dtype = jnp.bfloat16   # bf16 weights/activations; f32 accumulation in-kernel

    key = jax.random.PRNGKey(0)
    kx, k1, k2, k3 = jax.random.split(key, 4)
    x = jax.random.normal(kx, (batch, seq, dim), dtype=jnp.float32).astype(dtype)
    # nn.Linear(dim, hidden_dim).weight -> [hidden_dim, dim]; w2 -> [dim, hidden_dim]
    w1 = (jax.random.normal(k1, (hidden_dim, dim), dtype=jnp.float32) * 0.02).astype(dtype)
    w2 = (jax.random.normal(k2, (dim, hidden_dim), dtype=jnp.float32) * 0.02).astype(dtype)
    w3 = (jax.random.normal(k3, (hidden_dim, dim), dtype=jnp.float32) * 0.02).astype(dtype)

    # One-time weight relayout (outside the per-call path in real serving).
    w13t, w2t = prepare_ffn_weights(w1, w2, w3)

    out = feed_forward(x, w13t, w2t)
    out = jax.block_until_ready(out)

    ref = _reference(x.astype(jnp.float32), w1.astype(jnp.float32),
                     w2.astype(jnp.float32), w3.astype(jnp.float32))

    assert out.shape == (batch, seq, dim)
    assert jnp.allclose(out.astype(jnp.float32), ref, atol=2e-2, rtol=2e-2), (
        "mismatch vs reference: max abs err = "
        f"{float(jnp.max(jnp.abs(out.astype(jnp.float32) - ref)))}")

    print("KERNEL_OK")
</pallas_src>

<mosaic_0001>
module attributes {stable_mosaic.version = 11 : i64} {
  func.func @_ffn_kernel(%arg0: i32, %arg1: i32, %arg2: memref<16x256xbf16, #tpu.memory_space<vmem>>, %arg3: memref<2x256x256xbf16, #tpu.memory_space<vmem>>, %arg4: memref<256x256xbf16, #tpu.memory_space<vmem>>, %arg5: memref<16x256xbf16, #tpu.memory_space<vmem>>, %arg6: memref<16x256xf32, #tpu.memory_space<vmem>>) attributes {dimension_semantics = [#tpu.dimension_semantics<parallel>, #tpu.dimension_semantics<arbitrary>], iteration_bounds = array<i64: 1, 3>, scalar_prefetch = 0 : i64, scratch_operands = 1 : i64, tpu.core_type = #tpu.core_type<tc>, window_params = [{transform_indices = @transform_0, window_bounds = array<i64: 16, 256>}, {transform_indices = @transform_1, window_bounds = array<i64: 2, 256, 256>}, {transform_indices = @transform_2, window_bounds = array<i64: 256, 256>}, {transform_indices = @transform_3, window_bounds = array<i64: 16, 256>}]} {
    %c0_i32 = arith.constant 0 : i32
    %0 = arith.cmpi eq, %arg1, %c0_i32 : i32
    %1 = arith.extui %0 : i1 to i32
    %c0_i32_0 = arith.constant 0 : i32
    %2 = arith.cmpi ne, %1, %c0_i32_0 : i32
    scf.if %2 {
      %cst_17 = arith.constant 0.000000e+00 : f32
      %26 = vector.broadcast %cst_17 : f32 to vector<16x256xf32>
      %c0_18 = arith.constant 0 : index
      %c0_19 = arith.constant 0 : index
      %27 = vector.load %arg6[%c0_18, %c0_19] : memref<16x256xf32, #tpu.memory_space<vmem>>, vector<16x256xf32>
      tpu.vector_store %arg6[%c0_18, %c0_19], %26 {strides = array<i32>} : memref<16x256xf32, #tpu.memory_space<vmem>>, vector<16x256xf32>,
    } else {
    }
    %c0 = arith.constant 0 : index
    %c0_1 = arith.constant 0 : index
    %3 = vector.load %arg2[%c0, %c0_1] : memref<16x256xbf16, #tpu.memory_space<vmem>>, vector<16x256xbf16>
    %c0_2 = arith.constant 0 : index
    %c0_3 = arith.constant 0 : index
    %c0_4 = arith.constant 0 : index
    %4 = vector.load %arg3[%c0_2, %c0_3, %c0_4] : memref<2x256x256xbf16, #tpu.memory_space<vmem>>, vector<1x256x256xbf16>
    %5 = vector.shape_cast %4 : vector<1x256x256xbf16> to vector<256x256xbf16>
    %cst = arith.constant dense<0.000000e+00> : vector<16x256xf32>
    %6 = tpu.matmul %3, %5, %cst {dimension_numbers = #tpu.dot_dimension_numbers<[1], [0], [0], [1], [0, 0, 1, 1], [], []>} : vector<16x256xbf16>, vector<256x256xbf16>, vector<16x256xf32> -> vector<16x256xf32>
    %c1 = arith.constant 1 : index
    %c0_5 = arith.constant 0 : index
    %c0_6 = arith.constant 0 : index
    %7 = vector.load %arg3[%c1, %c0_5, %c0_6] : memref<2x256x256xbf16, #tpu.memory_space<vmem>>, vector<1x256x256xbf16>
    %8 = vector.shape_cast %7 : vector<1x256x256xbf16> to vector<256x256xbf16>
    %cst_7 = arith.constant dense<0.000000e+00> : vector<16x256xf32>
    %9 = tpu.matmul %3, %8, %cst_7 {dimension_numbers = #tpu.dot_dimension_numbers<[1], [0], [0], [1], [0, 0, 1, 1], [], []>} : vector<16x256xbf16>, vector<256x256xbf16>, vector<16x256xf32> -> vector<16x256xf32>
    %10 = arith.negf %6 : vector<16x256xf32>
    %11 = math.exp %10 : vector<16x256xf32>
    %cst_8 = arith.constant 1.000000e+00 : f32
    %12 = vector.broadcast %cst_8 : f32 to vector<16x256xf32>
    %13 = arith.addf %12, %11 : vector<16x256xf32>
    %14 = arith.divf %12, %13 : vector<16x256xf32>
    %15 = arith.mulf %6, %14 : vector<16x256xf32>
    %16 = arith.mulf %15, %9 : vector<16x256xf32>
    %c0_9 = arith.constant 0 : index
    %c0_10 = arith.constant 0 : index
    %17 = vector.load %arg6[%c0_9, %c0_10] : memref<16x256xf32, #tpu.memory_space<vmem>>, vector<16x256xf32>
    %18 = arith.truncf %16 : vector<16x256xf32> to vector<16x256xbf16>
    %c0_11 = arith.constant 0 : index
    %c0_12 = arith.constant 0 : index
    %19 = vector.load %arg4[%c0_11, %c0_12] : memref<256x256xbf16, #tpu.memory_space<vmem>>, vector<256x256xbf16>
    %cst_13 = arith.constant dense<0.000000e+00> : vector<16x256xf32>
    %20 = tpu.matmul %18, %19, %cst_13 {dimension_numbers = #tpu.dot_dimension_numbers<[1], [0], [0], [1], [0, 0, 1, 1], [], []>} : vector<16x256xbf16>, vector<256x256xbf16>, vector<16x256xf32> -> vector<16x256xf32>
    %21 = arith.addf %17, %20 : vector<16x256xf32>
    %c0_14 = arith.constant 0 : index
    %c0_15 = arith.constant 0 : index
    %22 = vector.load %arg6[%c0_14, %c0_15] : memref<16x256xf32, #tpu.memory_space<vmem>>, vector<16x256xf32>
    tpu.vector_store %arg6[%c0_14, %c0_15], %21 {strides = array<i32>} : memref<16x256xf32, #tpu.memory_space<vmem>>, vector<16x256xf32>,
    %c2_i32 = arith.constant 2 : i32
    %23 = arith.cmpi eq, %arg1, %c2_i32 : i32
    %24 = arith.extui %23 : i1 to i32
    %c0_i32_16 = arith.constant 0 : i32
    %25 = arith.cmpi ne, %24, %c0_i32_16 : i32
    scf.if %25 {
      %c0_17 = arith.constant 0 : index
      %c0_18 = arith.constant 0 : index
      %26 = vector.load %arg6[%c0_17, %c0_18] : memref<16x256xf32, #tpu.memory_space<vmem>>, vector<16x256xf32>
      %27 = arith.truncf %26 : vector<16x256xf32> to vector<16x256xbf16>
      %c0_19 = arith.constant 0 : index
      %c0_20 = arith.constant 0 : index
      %28 = vector.load %arg5[%c0_19, %c0_20] : memref<16x256xbf16, #tpu.memory_space<vmem>>, vector<16x256xbf16>
      tpu.vector_store %arg5[%c0_19, %c0_20], %27 {strides = array<i32>} : memref<16x256xbf16, #tpu.memory_space<vmem>>, vector<16x256xbf16>,
    } else {
    }
    return
  }
  func.func @transform_0(%arg0: i32, %arg1: i32) -> (i32, i32) {
    %c0_i32 = arith.constant 0 : i32
    %c0_i32_0 = arith.constant 0 : i32
    return %arg0, %c0_i32 : i32, i32
  }
  func.func @transform_1(%arg0: i32, %arg1: i32) -> (i32, i32, i32) {
    %c0_i32 = arith.constant 0 : i32
    %c0_i32_0 = arith.constant 0 : i32
    %c0_i32_1 = arith.constant 0 : i32
    return %c0_i32, %c0_i32_0, %arg1 : i32, i32, i32
  }
  func.func @transform_2(%arg0: i32, %arg1: i32) -> (i32, i32) {
    %c0_i32 = arith.constant 0 : i32
    %c0_i32_0 = arith.constant 0 : i32
    return %arg1, %c0_i32 : i32, i32
  }
  func.func @transform_3(%arg0: i32, %arg1: i32) -> (i32, i32) {
    %c0_i32 = arith.constant 0 : i32
    %c0_i32_0 = arith.constant 0 : i32
    return %arg0, %c0_i32 : i32, i32
  }
}

</mosaic_0001>

<bundles_post_ra>
// kernel: _feed_forward_impl.1
= control target key start
LH: loop header
LB: loop body
LE: loop exit
PB: predicated region body
PF: predicated region fallthrough
CT: control target
= control target key end

     0   :  { %8 = vsyncpa [#allocation4], 0  ;;  %s2491_s0 = inlined_call_operand.hbm [shape: bf16[16,256], index: 0, kind: input, shape index: {}]   ;;  %s2492_s1 = inlined_call_operand.hbm [shape: bf16[2,256,768], index: 1, kind: input, shape index: {}]   ;;  %s2493_s2 = inlined_call_operand.hbm [shape: bf16[768,256], index: 2, kind: input, shape index: {}]   ;;  %s2494_s3 = inlined_call_operand.hbm [shape: bf16[16,256], index: 3, kind: output, shape index: {}]  }
   0x1   :  { %9 = vsyncpa [#allocation7], 0 }
   0x2   :  { %11 = vsyncpa [#allocation7 + $0x1], 0 }
   0x3   :  { %12 = vsyncpa [#allocation5], 0  ;;  %s2107_s12 = smov 0   ;;  %s2109_s13 = smov 0  }
   0x4   :  { %s2111_s14 = smov 0   ;;  %s2113_s15 = smov 0  }
   0x5   :  { %s2115_s16 = smov 0   ;;  %s2117_s17 = smov 0  }
   0x6 LB: > { %s27_s18 = sadd.s32 1, %s2073_s16  ;;  %s63_s19 = sadd.s32 1, %s2065_s14  ;;  %s2077_s17 = sphi %s2117_s17, %s18_s17   ;;  %s2073_s16 = sphi %s2115_s16, %s2505_s16   ;;  %s2069_s15 = sphi %s2113_s15, %s2504_s15   ;;  %s2065_s14 = sphi %s2111_s14, %s2503_s14   ;;  %s2061_s13 = sphi %s2109_s13, %s2502_s13   ;;  %s2057_s12 = sphi %s2107_s12, %s2501_s12  }
   0x7   : > { %p28_p0 = scmp.ge.s32.totalorder %s27_s18, 3  ;;  %p70_p1 = scmp.ne.s32.totalorder %s2065_s14, %s2061_s13 }
   0x8   : > { %p71_p2 = scmp.eq.s32.totalorder %s2077_s17, 0  ;;  %p1825_p5 = scmp.lt.s32.totalorder %s2077_s17, 3 }
   0x9   : > { %s2507_s18 = smov (%p28_p0, %s27_s18), 0  ;;  %s170_s22 = sand.u32 1, %s2077_s17  }
   0xa   : > { %p2144_p3 = por %p71_p2, %p70_p1  ;;  %s60_s21 = ssub.s32 %s2073_s16, %s2507_s18 }
   0xb   : > { %p61_p4 = scmp.eq.s32.totalorder %s60_s21, 0  ;;  %s172_s23 = sand.u32 1, %s2065_s14  }
   0xc   : > { %s1255_s25 = sshll.u32 %s172_s23, 9  ;;  %s1700_s26 = sshll.u32 %s2073_s16, 3 }
   0xd   : > { %s2154_s24 = scalar_select %p61_p4, %s2065_s14, %s63_s19  }
   0xe   : > { %s179_s29 = scalar_lea.hbm %s2492_s1, %s1700_s26  ;;  %s174_s30 = scalar_lea.vmem [#allocation6], %s1255_s25 }
   0xf   : > { %s182_s4 = sshll.u32 %s174_s30, 4  ;;  %s180_s5 = sshll.u32 %s179_s29, 4  ;;  %s183_s4 = int_to_ptr.vmem [resolvable:$true] %s182_s4  ;;  %s181_s5 = int_to_ptr.hbm [resolvable:$true] %s180_s5 }
  0x10   : > { %p2162_p6 = pnand %p1825_p5, %p2144_p3  ;;  %s2166_s7 = scalar_lea.sflag [#allocation7], %s170_s22 }
  0x11   : > { %s2079_s8 = smov 384   ;;  %s2080_s9 = smov 128  }
  0x12   : > { %s2081_s10 = smov 8   ;;  %s2174_s11 = sadd.s32 4294967295, %s2077_s17  }
  0x13   : > { %1820 = dma.hbm_to_vmem [thread:$0]  (!%p2162_p6), %s181_s5, 8192, %s183_s4, %s2166_s7, %s2079_s8, %s2080_s9, %s2081_s10  }
  0x14   : > { %p76_p7 = scmp.ne.s32.totalorder %s2061_s13, %s2057_s12  ;;  %p77_p8 = scmp.eq.s32.totalorder %s2174_s11, 0 }
  0x15   : > { %p1252_p9 = scmp.ge.s32.totalorder %s2077_s17, 1  ;;  %p139_p10 = scmp.lt.s32.totalorder %s2077_s17, 4 }
  0x16   : > { %p2183_p11 = por %p77_p8, %p76_p7  ;;  %s154_s22 = sshll.u32 %s2491_s0, 4  ;;  %s155_s22 = int_to_ptr.hbm [resolvable:$true] %s154_s22 }
  0x17   : > { %p2190_p12 = pnand %p1252_p9, %p139_p10  ;;  %s1258_s12 = sshll.u32 %s172_s23, 8 }
  0x18   : > { %s2082_s26 = smov [#allocation3]   ;;  %s1702_s28 = sshll.u32 %s2073_s16, 8 }
  0x19   : > { %p1813_p13 = pneg %p2190_p12  ;;  %s156_s27 = sshll.u32 %s2082_s26, 4  ;;  %s157_s27 = int_to_ptr.vmem [resolvable:$true] %s156_s27 }
  0x1a   : > { %s202_s4 = scalar_lea.hbm %s2493_s2, %s1702_s28  ;;  %s196_s5 = scalar_lea.vmem [#allocation8], %s1258_s12 }
  0x1b   : > { %p1814_p0 = pnand %p1813_p13, %p77_p8  ;;  %s205_s8 = sshll.u32 %s196_s5, 4  ;;  %s206_s8 = int_to_ptr.vmem [resolvable:$true] %s205_s8 }
  0x1c   : > { %s203_s20 = sshll.u32 %s202_s4, 4  ;;  %217 = sbr.rel (%p2190_p12) target bundleno = 425 (0x1a9), region = 32  ;;  %s204_s20 = int_to_ptr.hbm [resolvable:$true] %s203_s20 }
  0x1d   : > { %1816 = dma.hbm_to_vmem [thread:$0]  (!%p1814_p0), %s155_s22, 256, %s157_s27, [#allocation4], %s2080_s9, %s2080_s9, %s2081_s10  }
  0x1e   : > { %1823 = dma.hbm_to_vmem [thread:$0]  (!%p2162_p6), %s204_s20, 4096, %s206_s8, %s2166_s7, %s2080_s9, %s2080_s9, %s2081_s10  }
  0x21   : > { %2044 = dma.done.wait (%p77_p8), [#allocation4], 256  }
  0x22   : > { %2046 = vsyncadd (%p77_p8), [#allocation4], 4294967040  ;;  %s224_s23 = sand.u32 1, %s2174_s11   ;;  %s226_s21 = sand.u32 1, %s2061_s13  }
  0x23   : > { %s1264_s22 = sshll.u32 %s226_s21, 9  ;;  %s225_s6 = scalar_lea.sflag [#allocation7], %s224_s23 }
  0x24   : > { %s2219_s12 = scalar_lea.vmem [#allocation6], %s1264_s22 }
  0x25   : > { %2048 = dma.done.wait (%p2183_p11), %s225_s6, 12288  }
  0x26   : > { %2050 = vsyncadd (%p2183_p11), %s225_s6, 4294955008  ;;  %s1265_s7 = sshll.u32 %s226_s21, 8  ;;  %p1266_p1 = scmp.ne.s32.totalorder %s2069_s15, 0 }
  0x27   : > { %s2225_s9 = scalar_lea.vmem [#allocation8], %s1265_s7 }
  0x28   : > { %269 = sbr.rel (%p1266_p1) target bundleno = 50 (0x32), region = 48 }
  0x2d   : > { %v2083_v0 = vmov 0.0  }
  0x2e   : > { %270 = vst [vmem:[#allocation2 + $0x10] sm:$0xff] %v2083_v0 }
  0x2f   : > { %271 = vst [vmem:[#allocation2] sm:$0xff] %v2083_v0 }
  0x30   : > { %272 = vst [vmem:[#allocation2 + $0x18] sm:$0xff] %v2083_v0 }
  0x31   : > { %273 = vst [vmem:[#allocation2 + $0x8] sm:$0xff] %v2083_v0 }
  0x32 PF: > { %v1333_v1 = vld [vmem:[%s2219_s12 + $0x70] sm:$0xf]  ;;  %v1720_v2 = vld [vmem:[%s2219_s12 + $0x74] sm:$0xf0]  ;;  %v1719_v6 = vld [vmem:[%s2219_s12 + $0x74] sm:$0xf] }
  0x33   : > { %v1397_v3 = vld [vmem:[%s2219_s12 + $0xf0] sm:$0xf]  ;;  %v1334_v4 = vor.u32 %v1720_v2, %v1333_v1  ;;  %v1736_v5 = vld [vmem:[%s2219_s12 + $0xf4] sm:$0xf0]  ;;  %v1335_v7 = vld [vmem:[%s2219_s12 + $0x78] sm:$0xf0] }
  0x34   : > { %v1398_v8 = vor.u32 %v1736_v5, %v1397_v3  ;;  %v1338_v9 = vor.u32 %v1719_v6, %v1335_v7  ;;  %v1735_v10 = vld [vmem:[%s2219_s12 + $0xf4] sm:$0xf]  ;;  %v1399_v11 = vld [vmem:[%s2219_s12 + $0xf8] sm:$0xf0]  ;;  %v1325_v12 = vld [vmem:[%s2219_s12 + $0x60] sm:$0xf] }
  0x35   : > { %478 = vmatpush.bf16.msra.mxu0 %v1334_v4  ;;  %v1402_v13 = vor.u32 %v1735_v10, %v1399_v11  ;;  %v1718_v14 = vld [vmem:[%s2219_s12 + $0x64] sm:$0xf0]  ;;  %v1389_v15 = vld [vmem:[%s2219_s12 + $0xe0] sm:$0xf]  ;;  %v1717_v19 = vld [vmem:[%s2219_s12 + $0x64] sm:$0xf] }
  0x36   : > { %v1734_v16 = vld [vmem:[%s2219_s12 + $0xe4] sm:$0xf0]  ;;  %492 = vmatpush.bf16.msra.mxu1 %v1398_v8  ;;  %506 = vmatpush.bf16.msra.mxu2 %v1338_v9  ;;  %v1326_v17 = vor.u32 %v1718_v14, %v1325_v12  ;;  %v1327_v20 = vld [vmem:[%s2219_s12 + $0x68] sm:$0xf0]  ;;  %v1733_v21 = vld [vmem:[%s2219_s12 + $0xe4] sm:$0xf] }
  0x37   : > { %v1390_v18 = vor.u32 %v1734_v16, %v1389_v15  ;;  %520 = vmatpush.bf16.msra.mxu3 %v1402_v13  ;;  %v1330_v22 = vor.u32 %v1717_v19, %v1327_v20  ;;  %v1391_v23 = vld [vmem:[%s2219_s12 + $0xe8] sm:$0xf0]  ;;  %v1317_v24 = vld [vmem:[%s2219_s12 + $0x50] sm:$0xf]  ;;  %v1716_v25 = vld [vmem:[%s2219_s12 + $0x54] sm:$0xf0] }
  0x38   : > { %v1394_v26 = vor.u32 %v1733_v21, %v1391_v23  ;;  %v1381_v27 = vld [vmem:[%s2219_s12 + $0xd0] sm:$0xf]  ;;  %v1732_v28 = vld [vmem:[%s2219_s12 + $0xd4] sm:$0xf0]  ;;  %v1715_v29 = vld [vmem:[%s2219_s12 + $0x54] sm:$0xf]  ;;  %v1318_v30 = vor.u32 %v1716_v25, %v1317_v24 }
  0x39   : > { %479 = vmatpush.bf16.msra.mxu0 %v1326_v17  ;;  %v1319_v31 = vld [vmem:[%s2219_s12 + $0x58] sm:$0xf0]  ;;  %v1731_v32 = vld [vmem:[%s2219_s12 + $0xd4] sm:$0xf]  ;;  %v1382_v34 = vor.u32 %v1732_v28, %v1381_v27  ;;  %v1309_v36 = vld [vmem:[%s2219_s12 + $0x40] sm:$0xf] }
  0x3a   : > { %v1383_v33 = vld [vmem:[%s2219_s12 + $0xd8] sm:$0xf0]  ;;  %493 = vmatpush.bf16.msra.mxu1 %v1390_v18  ;;  %507 = vmatpush.bf16.msra.mxu2 %v1330_v22  ;;  %v1322_v35 = vor.u32 %v1715_v29, %v1319_v31  ;;  %v1714_v37 = vld [vmem:[%s2219_s12 + $0x44] sm:$0xf0]  ;;  %v1373_v38 = vld [vmem:[%s2219_s12 + $0xc0] sm:$0xf] }
  0x3b   : > { %521 = vmatpush.bf16.msra.mxu3 %v1394_v26  ;;  %v1386_v39 = vor.u32 %v1731_v32, %v1383_v33  ;;  %v1730_v40 = vld [vmem:[%s2219_s12 + $0xc4] sm:$0xf0]  ;;  %v1713_v41 = vld [vmem:[%s2219_s12 + $0x44] sm:$0xf]  ;;  %v1311_v42 = vld [vmem:[%s2219_s12 + $0x48] sm:$0xf0]  ;;  %v1310_v45 = vor.u32 %v1714_v37, %v1309_v36 }
  0x3c   : > { %v1729_v43 = vld [vmem:[%s2219_s12 + $0xc4] sm:$0xf]  ;;  %v1375_v44 = vld [vmem:[%s2219_s12 + $0xc8] sm:$0xf0]  ;;  %v1374_v46 = vor.u32 %v1730_v40, %v1373_v38  ;;  %v1314_v47 = vor.u32 %v1713_v41, %v1311_v42  ;;  %v1301_v48 = vld [vmem:[%s2219_s12 + $0x30] sm:$0xf] }
  0x3d   : > { %480 = vmatpush.bf16.msra.mxu0 %v1318_v30  ;;  %v1712_v49 = vld [vmem:[%s2219_s12 + $0x34] sm:$0xf0]  ;;  %v1365_v50 = vld [vmem:[%s2219_s12 + $0xb0] sm:$0xf]  ;;  %v1378_v51 = vor.u32 %v1729_v43, %v1375_v44  ;;  %v1711_v53 = vld [vmem:[%s2219_s12 + $0x34] sm:$0xf] }
  0x3e   : > { %494 = vmatpush.bf16.msra.mxu1 %v1382_v34  ;;  %508 = vmatpush.bf16.msra.mxu2 %v1322_v35  ;;  %v1728_v52 = vld [vmem:[%s2219_s12 + $0xb4] sm:$0xf0]  ;;  %v1303_v54 = vld [vmem:[%s2219_s12 + $0x38] sm:$0xf0]  ;;  %v1727_v55 = vld [vmem:[%s2219_s12 + $0xb4] sm:$0xf]  ;;  %v1302_v57 = vor.u32 %v1712_v49, %v1301_v48 }
  0x3f   : > { %522 = vmatpush.bf16.msra.mxu3 %v1386_v39  ;;  %v1367_v56 = vld [vmem:[%s2219_s12 + $0xb8] sm:$0xf0]  ;;  %v1366_v58 = vor.u32 %v1728_v52, %v1365_v50  ;;  %v1306_v59 = vor.u32 %v1711_v53, %v1303_v54  ;;  %v1293_v60 = vld [vmem:[%s2219_s12 + $0x20] sm:$0xf]  ;;  %v1710_v61 = vld [vmem:[%s2219_s12 + $0x24] sm:$0xf0] }
  0x40   : > { %v1357_v62 = vld [vmem:[%s2219_s12 + $0xa0] sm:$0xf]  ;;  %v1370_v63 = vor.u32 %v1727_v55, %v1367_v56  ;;  %v1726_v0 = vld [vmem:[%s2219_s12 + $0xa4] sm:$0xf0]  ;;  %v1709_v1 = vld [vmem:[%s2219_s12 + $0x24] sm:$0xf]  ;;  %v1294_v5 = vor.u32 %v1710_v61, %v1293_v60 }
  0x41   : > { %481 = vmatpush.bf16.msra.mxu0 %v1310_v45  ;;  %v1295_v2 = vld [vmem:[%s2219_s12 + $0x28] sm:$0xf0]  ;;  %v1725_v3 = vld [vmem:[%s2219_s12 + $0xa4] sm:$0xf]  ;;  %v1358_v6 = vor.u32 %v1726_v0, %v1357_v62  ;;  %v1285_v8 = vld [vmem:[%s2219_s12 + $0x10] sm:$0xf] }
  0x42   : > { %495 = vmatpush.bf16.msra.mxu1 %v1374_v46  ;;  %509 = vmatpush.bf16.msra.mxu2 %v1314_v47  ;;  %v1359_v4 = vld [vmem:[%s2219_s12 + $0xa8] sm:$0xf0]  ;;  %v1298_v7 = vor.u32 %v1709_v1, %v1295_v2  ;;  %v1708_v9 = vld [vmem:[%s2219_s12 + $0x14] sm:$0xf0]  ;;  %v1349_v10 = vld [vmem:[%s2219_s12 + $0x90] sm:$0xf] }
  0x43   : > { %523 = vmatpush.bf16.msra.mxu3 %v1378_v51  ;;  %v1362_v11 = vor.u32 %v1725_v3, %v1359_v4  ;;  %v1724_v12 = vld [vmem:[%s2219_s12 + $0x94] sm:$0xf0]  ;;  %v1707_v13 = vld [vmem:[%s2219_s12 + $0x14] sm:$0xf]  ;;  %v1287_v14 = vld [vmem:[%s2219_s12 + $0x18] sm:$0xf0]  ;;  %v1286_v17 = vor.u32 %v1708_v9, %v1285_v8 }
  0x44   : > { %v1723_v15 = vld [vmem:[%s2219_s12 + $0x94] sm:$0xf]  ;;  %v1351_v16 = vld [vmem:[%s2219_s12 + $0x98] sm:$0xf0]  ;;  %v1277_v18 = vld [vmem:[%s2219_s12] sm:$0xf]  ;;  %v1350_v21 = vor.u32 %v1724_v12, %v1349_v10  ;;  %v1290_v22 = vor.u32 %v1707_v13, %v1287_v14 }
  0x45   : > { %482 = vmatpush.bf16.msra.mxu0 %v1302_v57  ;;  %v1706_v19 = vld [vmem:[%s2219_s12 + $0x4] sm:$0xf0]  ;;  %v1341_v20 = vld [vmem:[%s2219_s12 + $0x80] sm:$0xf]  ;;  %v1705_v24 = vld [vmem:[%s2219_s12 + $0x4] sm:$0xf]  ;;  %v1354_v26 = vor.u32 %v1723_v15, %v1351_v16 }
  0x46   : > { %496 = vmatpush.bf16.msra.mxu1 %v1366_v58  ;;  %510 = vmatpush.bf16.msra.mxu2 %v1306_v59  ;;  %v1722_v23 = vld [vmem:[%s2219_s12 + $0x84] sm:$0xf0]  ;;  %v1279_v25 = vld [vmem:[%s2219_s12 + $0x8] sm:$0xf0]  ;;  %v1721_v27 = vld [vmem:[%s2219_s12 + $0x84] sm:$0xf]  ;;  %v1278_v33 = vor.u32 %v1706_v19, %v1277_v18 }
  0x47   : > { %524 = vmatpush.bf16.msra.mxu3 %v1370_v63  ;;  %v1343_v28 = vld [vmem:[%s2219_s12 + $0x88] sm:$0xf0]  ;;  %v1493_v29 = vld [vmem:[%s2219_s12 + $0x170] sm:$0xf]  ;;  %v1752_v30 = vld [vmem:[%s2219_s12 + $0x174] sm:$0xf0]  ;;  %v1342_v37 = vor.u32 %v1722_v23, %v1341_v20  ;;  %v1282_v38 = vor.u32 %v1705_v24, %v1279_v25 }
  0x48   : > { %v1557_v31 = vld [vmem:[%s2219_s12 + $0x1f0] sm:$0xf]  ;;  %v1768_v32 = vld [vmem:[%s2219_s12 + $0x1f4] sm:$0xf0]  ;;  %v1751_v34 = vld [vmem:[%s2219_s12 + $0x174] sm:$0xf]  ;;  %v1346_v42 = vor.u32 %v1721_v27, %v1343_v28  ;;  %v1494_v43 = vor.u32 %v1752_v30, %v1493_v29 }
  0x49   : > { %483 = vmatpush.bf16.msra.mxu0 %v1294_v5  ;;  %v1495_v35 = vld [vmem:[%s2219_s12 + $0x178] sm:$0xf0]  ;;  %v1767_v36 = vld [vmem:[%s2219_s12 + $0x1f4] sm:$0xf]  ;;  %v1269_v40 = vld [vmem:[#allocation3] sm:$0xf]  ;;  %v1558_v46 = vor.u32 %v1768_v32, %v1557_v31 }
  0x4a   : > { %497 = vmatpush.bf16.msra.mxu1 %v1358_v6  ;;  %511 = vmatpush.bf16.msra.mxu2 %v1298_v7  ;;  %v1559_v39 = vld [vmem:[%s2219_s12 + $0x1f8] sm:$0xf0]  ;;  %v1704_v41 = vld [vmem:[#allocation3 + $0x4] sm:$0xf0]  ;;  %v1703_v44 = vld [vmem:[#allocation3 + $0x4] sm:$0xf]  ;;  %v1498_v47 = vor.u32 %v1751_v34, %v1495_v35 }
  0x4b   : > { %525 = vmatpush.bf16.msra.mxu3 %v1362_v11  ;;  %v1271_v45 = vld [vmem:[#allocation3 + $0x8] sm:$0xf0]  ;;  %v1485_v48 = vld [vmem:[%s2219_s12 + $0x160] sm:$0xf]  ;;  %v1750_v49 = vld [vmem:[%s2219_s12 + $0x164] sm:$0xf0]  ;;  %v1562_v51 = vor.u32 %v1767_v36, %v1559_v39  ;;  %v2303_v52 = vor.u32 %v1704_v41, %v1269_v40 }
  0x4c   : > { %v1549_v50 = vld [vmem:[%s2219_s12 + $0x1e0] sm:$0xf]  ;;  %v1766_v53 = vld [vmem:[%s2219_s12 + $0x1e4] sm:$0xf0]  ;;  %v1749_v54 = vld [vmem:[%s2219_s12 + $0x164] sm:$0xf]  ;;  %v2308_v56 = vor.u32 %v1703_v44, %v1271_v45  ;;  %v1486_v59 = vor.u32 %v1750_v49, %v1485_v48 }
  0x4d   : > { %484 = vmatpush.bf16.msra.mxu0 %v1286_v17  ;;  %v1487_v55 = vld [vmem:[%s2219_s12 + $0x168] sm:$0xf0]  ;;  %v1765_v57 = vld [vmem:[%s2219_s12 + $0x1e4] sm:$0xf]  ;;  %v1550_v60 = vor.u32 %v1766_v53, %v1549_v50  ;;  %v1477_v62 = vld [vmem:[%s2219_s12 + $0x150] sm:$0xf] }
  0x4e   : > { %498 = vmatpush.bf16.msra.mxu1 %v1350_v21  ;;  %512 = vmatpush.bf16.msra.mxu2 %v1290_v22  ;;  %v1551_v58 = vld [vmem:[%s2219_s12 + $0x1e8] sm:$0xf0]  ;;  %v1490_v61 = vor.u32 %v1749_v54, %v1487_v55  ;;  %v1748_v63 = vld [vmem:[%s2219_s12 + $0x154] sm:$0xf0]  ;;  %v1541_v0 = vld [vmem:[%s2219_s12 + $0x1d0] sm:$0xf] }
  0x4f   : > { %526 = vmatpush.bf16.msra.mxu3 %v1354_v26  ;;  %v1554_v1 = vor.u32 %v1765_v57, %v1551_v58  ;;  %v1764_v2 = vld [vmem:[%s2219_s12 + $0x1d4] sm:$0xf0]  ;;  %v1747_v3 = vld [vmem:[%s2219_s12 + $0x154] sm:$0xf]  ;;  %v1479_v4 = vld [vmem:[%s2219_s12 + $0x158] sm:$0xf0]  ;;  %v1478_v7 = vor.u32 %v1748_v63, %v1477_v62 }
  0x50   : > { %v1763_v5 = vld [vmem:[%s2219_s12 + $0x1d4] sm:$0xf]  ;;  %v1543_v6 = vld [vmem:[%s2219_s12 + $0x1d8] sm:$0xf0]  ;;  %v1542_v8 = vor.u32 %v1764_v2, %v1541_v0  ;;  %v1482_v9 = vor.u32 %v1747_v3, %v1479_v4  ;;  %v1469_v10 = vld [vmem:[%s2219_s12 + $0x140] sm:$0xf] }
  0x51   : > { %485 = vmatpush.bf16.msra.mxu0 %v1278_v33  ;;  %v1746_v11 = vld [vmem:[%s2219_s12 + $0x144] sm:$0xf0]  ;;  %v1533_v12 = vld [vmem:[%s2219_s12 + $0x1c0] sm:$0xf]  ;;  %v1546_v13 = vor.u32 %v1763_v5, %v1543_v6  ;;  %v1745_v15 = vld [vmem:[%s2219_s12 + $0x144] sm:$0xf] }
  0x52   : > { %499 = vmatpush.bf16.msra.mxu1 %v1342_v37  ;;  %513 = vmatpush.bf16.msra.mxu2 %v1282_v38  ;;  %v1762_v14 = vld [vmem:[%s2219_s12 + $0x1c4] sm:$0xf0]  ;;  %v1471_v16 = vld [vmem:[%s2219_s12 + $0x148] sm:$0xf0]  ;;  %v1761_v17 = vld [vmem:[%s2219_s12 + $0x1c4] sm:$0xf]  ;;  %v1470_v19 = vor.u32 %v1746_v11, %v1469_v10 }
  0x53   : > { %527 = vmatpush.bf16.msra.mxu3 %v1346_v42  ;;  %v1535_v18 = vld [vmem:[%s2219_s12 + $0x1c8] sm:$0xf0]  ;;  %v1534_v20 = vor.u32 %v1762_v14, %v1533_v12  ;;  %v1474_v21 = vor.u32 %v1745_v15, %v1471_v16  ;;  %v1461_v22 = vld [vmem:[%s2219_s12 + $0x130] sm:$0xf]  ;;  %v1744_v23 = vld [vmem:[%s2219_s12 + $0x134] sm:$0xf0] }
  0x54   : > { %486 = vmatmul.bf16.vlgmr.msra.gmra.mxu0 %v2303_v52  ;;  %v1525_v24 = vld [vmem:[%s2219_s12 + $0x1b0] sm:$0xf]  ;;  %v1538_v25 = vor.u32 %v1761_v17, %v1535_v18  ;;  %v1760_v26 = vld [vmem:[%s2219_s12 + $0x1b4] sm:$0xf0]  ;;  %v1743_v27 = vld [vmem:[%s2219_s12 + $0x134] sm:$0xf]  ;;  %v1462_v31 = vor.u32 %v1744_v23, %v1461_v22 }
  0x55   : > { %727 = vmatpush.bf16.msrb.mxu0 %v1494_v43  ;;  %500 = vmatmul.bf16.vlgmr.msra.gmra.mxu1 %v2308_v56  ;;  %v1463_v28 = vld [vmem:[%s2219_s12 + $0x138] sm:$0xf0]  ;;  %v1759_v29 = vld [vmem:[%s2219_s12 + $0x1b4] sm:$0xf]  ;;  %v1526_v32 = vor.u32 %v1760_v26, %v1525_v24  ;;  %v1453_v34 = vld [vmem:[%s2219_s12 + $0x120] sm:$0xf] }
  0x56   : > { %741 = vmatpush.bf16.msrb.mxu1 %v1558_v46  ;;  %755 = vmatpush.bf16.msrb.mxu2 %v1498_v47  ;;  %v1527_v30 = vld [vmem:[%s2219_s12 + $0x1b8] sm:$0xf0]  ;;  %v1466_v33 = vor.u32 %v1743_v27, %v1463_v28  ;;  %v1742_v35 = vld [vmem:[%s2219_s12 + $0x124] sm:$0xf0]  ;;  %v1517_v36 = vld [vmem:[%s2219_s12 + $0x1a0] sm:$0xf] }
  0x57   : > { %769 = vmatpush.bf16.msrb.mxu3 %v1562_v51  ;;  %514 = vmatmul.bf16.vlgmr.msra.gmra.mxu2 %v2303_v52  ;;  %v1530_v37 = vor.u32 %v1759_v29, %v1527_v30  ;;  %v1758_v38 = vld [vmem:[%s2219_s12 + $0x1a4] sm:$0xf0]  ;;  %v1741_v39 = vld [vmem:[%s2219_s12 + $0x124] sm:$0xf]  ;;  %v1455_v40 = vld [vmem:[%s2219_s12 + $0x128] sm:$0xf0]  ;;  %v1454_v43 = vor.u32 %v1742_v35, %v1453_v34 }
  0x58   : > { %528 = vmatmul.bf16.vlgmr.msra.gmra.mxu3 %v2308_v56  ;;  %v1757_v41 = vld [vmem:[%s2219_s12 + $0x1a4] sm:$0xf]  ;;  %v1519_v42 = vld [vmem:[%s2219_s12 + $0x1a8] sm:$0xf0]  ;;  %v1518_v44 = vor.u32 %v1758_v38, %v1517_v36  ;;  %v1458_v45 = vor.u32 %v1741_v39, %v1455_v40  ;;  %v1445_v46 = vld [vmem:[%s2219_s12 + $0x110] sm:$0xf] }
  0x59   : > { %728 = vmatpush.bf16.msrb.mxu0 %v1486_v59  ;;  %v1740_v47 = vld [vmem:[%s2219_s12 + $0x114] sm:$0xf0]  ;;  %v1509_v48 = vld [vmem:[%s2219_s12 + $0x190] sm:$0xf]  ;;  %v1522_v49 = vor.u32 %v1757_v41, %v1519_v42  ;;  %v1739_v51 = vld [vmem:[%s2219_s12 + $0x114] sm:$0xf] }
  0x5a   : > { %742 = vmatpush.bf16.msrb.mxu1 %v1550_v60  ;;  %756 = vmatpush.bf16.msrb.mxu2 %v1490_v61  ;;  %v1756_v50 = vld [vmem:[%s2219_s12 + $0x194] sm:$0xf0]  ;;  %v1447_v53 = vld [vmem:[%s2219_s12 + $0x118] sm:$0xf0]  ;;  %v1755_v54 = vld [vmem:[%s2219_s12 + $0x194] sm:$0xf]  ;;  %v1446_v57 = vor.u32 %v1740_v47, %v1445_v46 }
  0x5b   : > { %770 = vmatpush.bf16.msrb.mxu3 %v1554_v1  ;;  %v1511_v55 = vld [vmem:[%s2219_s12 + $0x198] sm:$0xf0]  ;;  %v1510_v58 = vor.u32 %v1756_v50, %v1509_v48  ;;  %v1450_v59 = vor.u32 %v1739_v51, %v1447_v53  ;;  %v1437_v60 = vld [vmem:[%s2219_s12 + $0x100] sm:$0xf]  ;;  %v1738_v61 = vld [vmem:[%s2219_s12 + $0x104] sm:$0xf0] }
  0x5c   : > { %v1501_v62 = vld [vmem:[%s2219_s12 + $0x180] sm:$0xf]  ;;  %v1514_v63 = vor.u32 %v1755_v54, %v1511_v55  ;;  %v1754_v0 = vld [vmem:[%s2219_s12 + $0x184] sm:$0xf0]  ;;  %v1737_v1 = vld [vmem:[%s2219_s12 + $0x104] sm:$0xf]  ;;  %v1438_v5 = vor.u32 %v1738_v61, %v1437_v60 }
  0x5d   : > { %729 = vmatpush.bf16.msrb.mxu0 %v1478_v7  ;;  %v1439_v2 = vld [vmem:[%s2219_s12 + $0x108] sm:$0xf0]  ;;  %v1753_v3 = vld [vmem:[%s2219_s12 + $0x184] sm:$0xf]  ;;  %v1502_v6 = vor.u32 %v1754_v0, %v1501_v62  ;;  %v1784_v10 = vld [vmem:[%s2225_s9 + $0x74] sm:$0xf0] }
  0x5e   : > { %743 = vmatpush.bf16.msrb.mxu1 %v1542_v8  ;;  %757 = vmatpush.bf16.msrb.mxu2 %v1482_v9  ;;  %v1503_v4 = vld [vmem:[%s2219_s12 + $0x188] sm:$0xf0]  ;;  %v1442_v7 = vor.u32 %v1737_v1, %v1439_v2  ;;  %v1625_v9 = vld [vmem:[%s2225_s9 + $0x70] sm:$0xf]  ;;  %v1783_v11 = vld [vmem:[%s2225_s9 + $0x74] sm:$0xf] }
  0x5f   : > { %771 = vmatpush.bf16.msrb.mxu3 %v1546_v13  ;;  %v1506_v8 = vor.u32 %v1753_v3, %v1503_v4  ;;  %v1626_v12 = vor.u32 %v1784_v10, %v1625_v9  ;;  %v1627_v13 = vld [vmem:[%s2225_s9 + $0x78] sm:$0xf0]  ;;  %v1617_v15 = vld [vmem:[%s2225_s9 + $0x60] sm:$0xf]  ;;  %v1782_v16 = vld [vmem:[%s2225_s9 + $0x64] sm:$0xf0] }
  0x60   : > { %v1630_v14 = vor.u32 %v1783_v11, %v1627_v13  ;;  %v1618_v17 = vor.u32 %v1782_v16, %v1617_v15  ;;  %v1691_v23 = vld [vmem:[%s2225_s9 + $0xf8] sm:$0xf0]  ;;  %v1780_v26 = vld [vmem:[%s2225_s9 + $0x54] sm:$0xf0]  ;;  %v1779_v27 = vld [vmem:[%s2225_s9 + $0x54] sm:$0xf] }
  0x61   : > { %730 = vmatpush.bf16.msrb.mxu0 %v1470_v19  ;;  %v1689_v19 = vld [vmem:[%s2225_s9 + $0xf0] sm:$0xf]  ;;  %v1611_v29 = vld [vmem:[%s2225_s9 + $0x58] sm:$0xf0]  ;;  %v1683_v35 = vld [vmem:[%s2225_s9 + $0xe8] sm:$0xf0] }
  0x62   : > { %744 = vmatpush.bf16.msrb.mxu1 %v1534_v20  ;;  %758 = vmatpush.bf16.msrb.mxu2 %v1474_v21  ;;  %v1800_v20 = vld [vmem:[%s2225_s9 + $0xf4] sm:$0xf0]  ;;  %v1799_v21 = vld [vmem:[%s2225_s9 + $0xf4] sm:$0xf]  ;;  %v1614_v30 = vor.u32 %v1779_v27, %v1611_v29  ;;  %v1778_v38 = vld [vmem:[%s2225_s9 + $0x44] sm:$0xf0] }
  0x63   : > { %772 = vmatpush.bf16.msrb.mxu3 %v1538_v25  ;;  %v1690_v22 = vor.u32 %v1800_v20, %v1689_v19  ;;  %v1694_v24 = vor.u32 %v1799_v21, %v1691_v23  ;;  %v1609_v25 = vld [vmem:[%s2225_s9 + $0x50] sm:$0xf]  ;;  %v1777_v39 = vld [vmem:[%s2225_s9 + $0x44] sm:$0xf]  ;;  %v1603_v41 = vld [vmem:[%s2225_s9 + $0x48] sm:$0xf0] }
  0x64   : > { %v1610_v28 = vor.u32 %v1780_v26, %v1609_v25  ;;  %v1606_v42 = vor.u32 %v1777_v39, %v1603_v41  ;;  %v1675_v47 = vld [vmem:[%s2225_s9 + $0xd8] sm:$0xf0]  ;;  %v1776_v50 = vld [vmem:[%s2225_s9 + $0x34] sm:$0xf0]  ;;  %v1775_v51 = vld [vmem:[%s2225_s9 + $0x34] sm:$0xf] }
  0x65   : > { %731 = vmatpush.bf16.msrb.mxu0 %v1462_v31  ;;  %v1681_v31 = vld [vmem:[%s2225_s9 + $0xe0] sm:$0xf]  ;;  %v1595_v55 = vld [vmem:[%s2225_s9 + $0x38] sm:$0xf0]  ;;  %v1794_v60 = vld [vmem:[%s2225_s9 + $0xc4] sm:$0xf0] }
  0x66   : > { %745 = vmatpush.bf16.msrb.mxu1 %v1526_v32  ;;  %759 = vmatpush.bf16.msrb.mxu2 %v1466_v33  ;;  %v1798_v32 = vld [vmem:[%s2225_s9 + $0xe4] sm:$0xf0]  ;;  %v1797_v33 = vld [vmem:[%s2225_s9 + $0xe4] sm:$0xf]  ;;  %v1667_v0 = vld [vmem:[%s2225_s9 + $0xc8] sm:$0xf0] }
  0x67   : > { %773 = vmatpush.bf16.msrb.mxu3 %v1530_v37  ;;  %v1682_v34 = vor.u32 %v1798_v32, %v1681_v31  ;;  %v1686_v36 = vor.u32 %v1797_v33, %v1683_v35  ;;  %v1601_v37 = vld [vmem:[%s2225_s9 + $0x40] sm:$0xf]  ;;  %v1793_v61 = vld [vmem:[%s2225_s9 + $0xc4] sm:$0xf]  ;;  %v1774_v3 = vld [vmem:[%s2225_s9 + $0x24] sm:$0xf0] }
  0x68   : > { %v1602_v40 = vor.u32 %v1778_v38, %v1601_v37  ;;  %v1670_v1 = vor.u32 %v1793_v61, %v1667_v0  ;;  %v1585_v2 = vld [vmem:[%s2225_s9 + $0x20] sm:$0xf]  ;;  %v1773_v4 = vld [vmem:[%s2225_s9 + $0x24] sm:$0xf]  ;;  %v1657_v9 = vld [vmem:[%s2225_s9 + $0xb0] sm:$0xf] }
  0x69   : > { %732 = vmatpush.bf16.msrb.mxu0 %v1454_v43  ;;  %v1673_v43 = vld [vmem:[%s2225_s9 + $0xd0] sm:$0xf]  ;;  %v1792_v10 = vld [vmem:[%s2225_s9 + $0xb4] sm:$0xf0]  ;;  %v1791_v11 = vld [vmem:[%s2225_s9 + $0xb4] sm:$0xf] }
  0x6a   : > { %746 = vmatpush.bf16.msrb.mxu1 %v1518_v44  ;;  %760 = vmatpush.bf16.msrb.mxu2 %v1458_v45  ;;  %v1796_v44 = vld [vmem:[%s2225_s9 + $0xd4] sm:$0xf0]  ;;  %v1795_v45 = vld [vmem:[%s2225_s9 + $0xd4] sm:$0xf]  ;;  %v1659_v13 = vld [vmem:[%s2225_s9 + $0xb8] sm:$0xf0] }
  0x6b   : > { %774 = vmatpush.bf16.msrb.mxu3 %v1522_v49  ;;  %v1674_v46 = vor.u32 %v1796_v44, %v1673_v43  ;;  %v1678_v48 = vor.u32 %v1795_v45, %v1675_v47  ;;  %v1593_v49 = vld [vmem:[%s2225_s9 + $0x30] sm:$0xf]  ;;  %v1662_v15 = vor.u32 %v1791_v11, %v1659_v13  ;;  %v1579_v20 = vld [vmem:[%s2225_s9 + $0x18] sm:$0xf0]  ;;  %v1790_v25 = vld [vmem:[%s2225_s9 + $0xa4] sm:$0xf0] }
  0x6c   : > { %v1594_v54 = vor.u32 %v1776_v50, %v1593_v49  ;;  %v1577_v16 = vld [vmem:[%s2225_s9 + $0x10] sm:$0xf]  ;;  %v1789_v26 = vld [vmem:[%s2225_s9 + $0xa4] sm:$0xf]  ;;  %v1651_v29 = vld [vmem:[%s2225_s9 + $0xa8] sm:$0xf0] }
  0x6d   : > { %733 = vmatpush.bf16.msrb.mxu0 %v1446_v57  ;;  %v1654_v31 = vor.u32 %v1789_v26, %v1651_v29  ;;  %v1569_v32 = vld [vmem:[%s2225_s9] sm:$0xf]  ;;  %v1770_v33 = vld [vmem:[%s2225_s9 + $0x4] sm:$0xf0]  ;;  %v1769_v37 = vld [vmem:[%s2225_s9 + $0x4] sm:$0xf] }
  0x6e   : > { %747 = vmatpush.bf16.msrb.mxu1 %v1510_v58  ;;  %761 = vmatpush.bf16.msrb.mxu2 %v1450_v59  ;;  %v1598_v58 = vor.u32 %v1775_v51, %v1595_v55  ;;  %v1665_v59 = vld [vmem:[%s2225_s9 + $0xc0] sm:$0xf]  ;;  %v1571_v38 = vld [vmem:[%s2225_s9 + $0x8] sm:$0xf0]  ;;  %v1641_v41 = vld [vmem:[%s2225_s9 + $0x90] sm:$0xf] }
  0x6f   : > { %775 = vmatpush.bf16.msrb.mxu3 %v1514_v63  ;;  %v1666_v63 = vor.u32 %v1794_v60, %v1665_v59  ;;  %v1787_v44 = vld [vmem:[%s2225_s9 + $0x94] sm:$0xf]  ;;  %v1643_v45 = vld [vmem:[%s2225_s9 + $0x98] sm:$0xf0]  ;;  %v1633_v50 = vld [vmem:[%s2225_s9 + $0x80] sm:$0xf] }
  0x70   : > { %v1786_v51 = vld [vmem:[%s2225_s9 + $0x84] sm:$0xf0]  ;;  %v1635_v55 = vld [vmem:[%s2225_s9 + $0x88] sm:$0xf0]  ;;  %p1695_p2 = scmp.ne.s32.totalorder %s2069_s15, 2 }
  0x71   : > { %734 = vmatpush.bf16.msrb.mxu0 %v1438_v5 }
  0x72   : > { %748 = vmatpush.bf16.msrb.mxu1 %v1502_v6  ;;  %762 = vmatpush.bf16.msrb.mxu2 %v1442_v7  ;;  %v1586_v6 = vor.u32 %v1774_v3, %v1585_v2  ;;  %v1587_v7 = vld [vmem:[%s2225_s9 + $0x28] sm:$0xf0] }
  0x73   : > { %776 = vmatpush.bf16.msrb.mxu3 %v1506_v8  ;;  %v1590_v8 = vor.u32 %v1773_v4, %v1587_v7 }
  0x74   : > { %735 = vmatmul.bf16.vlgmr.msrb.gmra.mxu0 %v2303_v52 }
  0x75   : > { %749 = vmatmul.bf16.vlgmr.msrb.gmra.mxu1 %v2308_v56  ;;  %763 = vmatmul.bf16.vlgmr.msrb.gmra.mxu2 %v2303_v52  ;;  %v1781_v52 = vld [vmem:[%s2225_s9 + $0x64] sm:$0xf] }
  0x76   : > { %777 = vmatmul.bf16.vlgmr.msrb.gmra.mxu3 %v2308_v56  ;;  %1065 = vmatpush.bf16.msra.mxu0 %v1626_v12  ;;  %v1619_v56 = vld [vmem:[%s2225_s9 + $0x68] sm:$0xf0]  ;;  %v1658_v12 = vor.u32 %v1792_v10, %v1657_v9 }
  0x77   : > { %1093 = vmatpush.bf16.msra.mxu2 %v1630_v14  ;;  %v1622_v18 = vor.u32 %v1781_v52, %v1619_v56  ;;  %1079 = vmatpush.bf16.msra.mxu1 %v1690_v22  ;;  %v1772_v52 = vld [vmem:[%s2225_s9 + $0x14] sm:$0xf0] }
  0x78   : > { %1107 = vmatpush.bf16.msra.mxu3 %v1694_v24  ;;  %v1578_v19 = vor.u32 %v1772_v52, %v1577_v16  ;;  %v1649_v24 = vld [vmem:[%s2225_s9 + $0xa0] sm:$0xf] }
  0x7a   : > { %1066 = vmatpush.bf16.msra.mxu0 %v1618_v17  ;;  %v1771_v17 = vld [vmem:[%s2225_s9 + $0x14] sm:$0xf] }
  0x7b   : > { %1094 = vmatpush.bf16.msra.mxu2 %v1622_v18  ;;  %1080 = vmatpush.bf16.msra.mxu1 %v1682_v34  ;;  %v1582_v23 = vor.u32 %v1771_v17, %v1579_v20 }
  0x7c   : > { %1108 = vmatpush.bf16.msra.mxu3 %v1686_v36  ;;  %v1570_v36 = vor.u32 %v1770_v33, %v1569_v32 }
  0x7e   : > { %1067 = vmatpush.bf16.msra.mxu0 %v1610_v28  ;;  %v1650_v28 = vor.u32 %v1790_v25, %v1649_v24 }
  0x7f   : > { %1095 = vmatpush.bf16.msra.mxu2 %v1614_v30  ;;  %1081 = vmatpush.bf16.msra.mxu1 %v1674_v46 }
  0x80   : > { %1109 = vmatpush.bf16.msra.mxu3 %v1678_v48  ;;  %v1646_v48 = vor.u32 %v1787_v44, %v1643_v45 }
  0x82   : > { %1068 = vmatpush.bf16.msra.mxu0 %v1602_v40  ;;  %v1574_v40 = vor.u32 %v1769_v37, %v1571_v38 }
  0x83   : > { %1096 = vmatpush.bf16.msra.mxu2 %v1606_v42  ;;  %1082 = vmatpush.bf16.msra.mxu1 %v1666_v63  ;;  %v1788_v42 = vld [vmem:[%s2225_s9 + $0x94] sm:$0xf0] }
  0x84   : > { %1110 = vmatpush.bf16.msra.mxu3 %v1670_v1  ;;  %v1642_v43 = vor.u32 %v1788_v42, %v1641_v41 }
  0x86   : > { %1069 = vmatpush.bf16.msra.mxu0 %v1594_v54  ;;  %v1785_v54 = vld [vmem:[%s2225_s9 + $0x84] sm:$0xf] }
  0x87   : > { %1097 = vmatpush.bf16.msra.mxu2 %v1598_v58  ;;  %1083 = vmatpush.bf16.msra.mxu1 %v1658_v12  ;;  %v1638_v59 = vor.u32 %v1785_v54, %v1635_v55 }
  0x88   : > { %1111 = vmatpush.bf16.msra.mxu3 %v1662_v15 }
  0x8a   : > { %1070 = vmatpush.bf16.msra.mxu0 %v1586_v6 }
  0x8b   : > { %1098 = vmatpush.bf16.msra.mxu2 %v1590_v8  ;;  %1084 = vmatpush.bf16.msra.mxu1 %v1650_v28 }
  0x8c   : > { %1112 = vmatpush.bf16.msra.mxu3 %v1654_v31 }
  0x8e   : > { %1071 = vmatpush.bf16.msra.mxu0 %v1578_v19 }
  0x8f   : > { %1099 = vmatpush.bf16.msra.mxu2 %v1582_v23  ;;  %1085 = vmatpush.bf16.msra.mxu1 %v1642_v43 }
  0x90   : > { %1113 = vmatpush.bf16.msra.mxu3 %v1646_v48 }
  0x92   : > { %1072 = vmatpush.bf16.msra.mxu0 %v1570_v36 }
  0x93   : > { %1100 = vmatpush.bf16.msra.mxu2 %v1574_v40 }
  0x94   : > { %1114 = vmatpush.bf16.msra.mxu3 %v1638_v59 }
  0xd1   : > { %v487_v53 = vpop.f32.mrf.mxu0 }
  0xd2   : > { %v501_v57 = vpop.f32.mrf.mxu1 }
  0xd3   : > { %v2403_v62 = vadd.f32 %v501_v57, %v487_v53  ;;  %v1634_v53 = vor.u32 %v1786_v51, %v1633_v50 }
  0xd5   : > { %v1563_v5 = vmul.f32 -1.442695, %v2403_v62  ;;  %1086 = vmatpush.bf16.msra.mxu1 %v1634_v53 }
  0xd7   : > { %1885 = vpow2.f32 %v1563_v5 }
  0xd9   : > { %v489_v18 = vpop.f32.mrf.mxu0 }
  0xda   : > { %v515_v14 = vpop.f32.mrf.mxu2  ;;  %v503_v22 = vpop.f32.mrf.mxu1 }
  0xdb   : > { %v529_v56 = vpop.f32.mrf.mxu3  ;;  %v2424_v27 = vadd.f32 %v503_v22, %v489_v18 }
  0xdc   : > { %v2419_v21 = vadd.f32 %v529_v56, %v515_v14 }
  0xdd   : > { %v1886_v34 = vpop.eup %1885  ;;  %v1565_v35 = vmul.f32 -1.442695, %v2424_v27 }
  0xde   : > { %v1564_v30 = vmul.f32 -1.442695, %v2419_v21  ;;  %v795_v39 = vadd.f32 1.0, %v1886_v34 }
  0xe0   : > { %1887 = vpow2.f32 %v1564_v30  ;;  %vm804_vm0 = vweird.f32 %v795_v39  ;;  %v810_v9 = vand.u32 2147483648, %v795_v39  ;;  %v808_v12 = vand.u32 2147483647, %v795_v39 }
  0xe1   : > { %1889 = vpow2.f32 %v1565_v35 }
  0xe2   : > { %1891 = vrcp.f32 %v795_v39  ;;  %v517_v46 = vpop.f32.mrf.mxu2  ;;  %v811_v17 = vor.u32 1.1754944e-38, %v810_v9  ;;  %vm809_vm3 = vcmp.eq.f32.partialorder %v808_v12, 8.507059e+37  ;;  %v869_v12 = vld [vmem:[#allocation2 + $0x18] sm:$0xff] }
  0xe3   : > { %v531_v47 = vpop.f32.mrf.mxu3 }
  0xe4   : > { %v2437_v49 = vadd.f32 %v531_v47, %v517_v46 }
  0xe6   : > { %v1888_v57 = vpop.eup %1887  ;;  %v1566_v58 = vmul.f32 -1.442695, %v2437_v49 }
  0xe7   : > { %v1890_v60 = vpop.eup %1889  ;;  %v2444_v61 = vadd.f32 1.0, %v1888_v57 }
  0xe8   : > { %v1892_v63 = vpop.eup %1891  ;;  %v797_v0 = vadd.f32 1.0, %v1890_v60  ;;  %1893 = vpow2.f32 %v1566_v58 }
  0xe9   : > { %v800_v1 = vmul.f32 %v1892_v63, %v795_v39  ;;  %1895 = vrcp.f32 %v2444_v61  ;;  %vm805_vm1 = vweird.f32 %v1892_v63  ;;  %v825_v25 = vand.u32 2147483648, %v2444_v61 }
  0xea   : > { %1897 = vrcp.f32 %v797_v0  ;;  %vm806_vm2 = vmor %vm804_vm0, %vm805_vm1  ;;  %v840_v18 = vand.u32 2147483648, %v797_v0  ;;  %v838_v20 = vand.u32 2147483647, %v797_v0  ;;  %vm834_vm6 = vweird.f32 %v797_v0 }
  0xeb   : > { %v801_v2 = vsub.f32 1.0, %v800_v1  ;;  %vm819_vm7 = vweird.f32 %v2444_v61  ;;  %v823_v29 = vand.u32 2147483647, %v2444_v61  ;;  %v826_v43 = vor.u32 1.1754944e-38, %v825_v25 }
  0xec   : > { %v841_v30 = vor.u32 1.1754944e-38, %v840_v18  ;;  %vm839_vm10 = vcmp.eq.f32.partialorder %v838_v20, 8.507059e+37 }
  0xed   : > { %v802_v3 = vmul.f32 %v1892_v63, %v801_v2  ;;  %vm824_vm11 = vcmp.eq.f32.partialorder %v823_v29, 8.507059e+37 }
  0xee   : > { %v1894_v4 = vpop.eup %1893 }
  0xef   : > { %v1896_v5 = vpop.eup %1895  ;;  %v803_v6 = vadd.f32 %v1892_v63, %v802_v3  ;;  %v2447_v7 = vadd.f32 1.0, %v1894_v4  ;;  %v867_v4 = vld [vmem:[#allocation2 + $0x10] sm:$0xff] }
  0xf0   : > { %v1898_v8 = vpop.eup %1897  ;;  %v815_v10 = vmul.f32 %v1896_v5, %v2444_v61  ;;  %vm820_vm5 = vweird.f32 %v1896_v5 }
  0xf1   : > { %v736_v11 = vpop.f32.mrf.mxu0  ;;  %v830_v13 = vmul.f32 %v1898_v8, %v797_v0  ;;  %1899 = vrcp.f32 %v2447_v7  ;;  %v807_v16 = vsel %vm806_vm2, %v1892_v63, %v803_v6  ;;  %vm835_vm4 = vweird.f32 %v1898_v8  ;;  %vm2456_vm9 = vmor %vm819_vm7, %vm820_vm5 }
  0xf2   : > { %v750_v14 = vpop.f32.mrf.mxu1  ;;  %v816_v15 = vsub.f32 1.0, %v815_v10  ;;  %v812_v22 = vsel %vm809_vm3, %v811_v17, %v807_v16  ;;  %vm836_vm8 = vmor %vm834_vm6, %vm835_vm4  ;;  %v855_v45 = vand.u32 2147483648, %v2447_v7  ;;  %v853_v46 = vand.u32 2147483647, %v2447_v7 }
  0xf3   : > { %v831_v52 = vsub.f32 1.0, %v830_v13  ;;  %v859_v34 = vmul.f32 %v812_v22, %v2403_v62  ;;  %v751_v37 = vadd.f32 %v750_v14, %v736_v11  ;;  %vm849_vm13 = vweird.f32 %v2447_v7 }
  0xf4   : > { %v817_v56 = vmul.f32 %v1896_v5, %v816_v15  ;;  %v856_v53 = vor.u32 1.1754944e-38, %v855_v45  ;;  %vm854_vm15 = vcmp.eq.f32.partialorder %v853_v46, 8.507059e+37 }
  0xf5   : > { %v832_v19 = vmul.f32 %v1898_v8, %v831_v52  ;;  %v863_v48 = vmul.f32 %v859_v34, %v751_v37  ;;  %v870_v52 = vld [vmem:[#allocation2 + $0x8] sm:$0xff] }
  0xf6   : > { %v818_v23 = vadd.f32 %v1896_v5, %v817_v56 }
  0xf7   : > { %v1900_v24 = vpop.eup %1899  ;;  %v833_v26 = vadd.f32 %v1898_v8, %v832_v19 }
  0xf8   : > { %v764_v28 = vpop.f32.mrf.mxu2  ;;  %v845_v31 = vmul.f32 %v1900_v24, %v2447_v7  ;;  %v822_v39 = vsel %vm2456_vm9, %v1896_v5, %v818_v23  ;;  %vm850_vm12 = vweird.f32 %v1900_v24 }
  0xf9   : > { %v778_v32 = vpop.f32.mrf.mxu3  ;;  %v738_v33 = vpop.f32.mrf.mxu0  ;;  %v837_v36 = vsel %vm836_vm8, %v1898_v8, %v833_v26  ;;  %v827_v47 = vsel %vm824_vm11, %v826_v43, %v822_v39  ;;  %vm851_vm14 = vmor %vm849_vm13, %vm850_vm12  ;;  %v868_v8 = vld [vmem:[#allocation2] sm:$0xff] }
  0xfa   : > { %v752_v38 = vpop.f32.mrf.mxu1  ;;  %v842_v40 = vsel %vm839_vm10, %v841_v30, %v837_v36  ;;  %v846_v41 = vsub.f32 1.0, %v845_v31  ;;  %v860_v57 = vmul.f32 %v827_v47, %v2419_v21  ;;  %v779_v58 = vadd.f32 %v778_v32, %v764_v28 }
  0xfb   : > { %v753_v42 = vadd.f32 %v752_v38, %v738_v33  ;;  %v861_v44 = vmul.f32 %v842_v40, %v2424_v27 }
  0xfc   : > { %v847_v62 = vmul.f32 %v1900_v24, %v846_v41  ;;  %v864_v0 = vmul.f32 %v860_v57, %v779_v58 }
  0xfd   : > { %v865_v50 = vmul.f32 %v861_v44, %v753_v42 }
  0xfe   : > { %v848_v51 = vadd.f32 %v1900_v24, %v847_v62 }
  0xff   : > { %v871_v54 = vpack.c.bf16 %v865_v50, %v863_v48 }
 0x100   : > { %v766_v55 = vpop.f32.mrf.mxu2  ;;  %v852_v27 = vsel %vm851_vm14, %v1900_v24, %v848_v51 }
 0x101   : > { %v780_v59 = vpop.f32.mrf.mxu3  ;;  %v857_v60 = vsel %vm854_vm15, %v856_v53, %v852_v27  ;;  %1073 = vmatmul.bf16.vlgmr.msra.gmra.mxu0 %v871_v54  ;;  %1101 = vmatmul.bf16.vlgmr.msra.gmra.mxu2 %v871_v54 }
 0x102   : > { %v781_v61 = vadd.f32 %v780_v59, %v766_v55  ;;  %v862_v63 = vmul.f32 %v857_v60, %v2437_v49 }
 0x104   : > { %v866_v1 = vmul.f32 %v862_v63, %v781_v61 }
 0x106   : > { %v872_v2 = vpack.c.bf16 %v866_v1, %v864_v0 }
 0x108   : > { %1087 = vmatmul.bf16.vlgmr.msra.gmra.mxu1 %v872_v2  ;;  %1115 = vmatmul.bf16.vlgmr.msra.gmra.mxu3 %v872_v2 }
 0x17e   : > { %v1074_v3 = vpop.f32.mrf.mxu0 }
 0x184   : > { %v1102_v7 = vpop.f32.mrf.mxu2 }
 0x185   : > { %v1088_v5 = vpop.f32.mrf.mxu1 }
 0x186   : > { %v1089_v6 = vadd.f32 %v1088_v5, %v1074_v3  ;;  %v1076_v11 = vpop.f32.mrf.mxu0 }
 0x188   : > { %v1121_v21 = vadd.f32 %v1089_v6, %v867_v4 }
 0x18a   : > { %1125 = vst [vmem:[#allocation2 + $0x10] sm:$0xff] %v1121_v21 }
 0x18b   : > { %v1116_v9 = vpop.f32.mrf.mxu3 }
 0x18c   : > { %v1117_v10 = vadd.f32 %v1116_v9, %v1102_v7  ;;  %v1104_v16 = vpop.f32.mrf.mxu2 }
 0x18d   : > { %v1090_v13 = vpop.f32.mrf.mxu1 }
 0x18e   : > { %v1122_v14 = vadd.f32 %v1117_v10, %v868_v8  ;;  %v1091_v49 = vadd.f32 %v1090_v13, %v1076_v11 }
 0x190   : > { %1126 = vst [vmem:[#allocation2] sm:$0xff] %v1122_v14  ;;  %v1123_v15 = vadd.f32 %v1091_v49, %v869_v12 }
 0x192   : > { %1127 = vst [vmem:[#allocation2 + $0x18] sm:$0xff] %v1123_v15 }
 0x193   : > { %v1118_v17 = vpop.f32.mrf.mxu3 }
 0x194   : > { %v1119_v56 = vadd.f32 %v1118_v17, %v1104_v16  ;;  %1132 = sbr.rel (%p1695_p2) target bundleno = 419 (0x1a3), region = 52 }
 0x196   : > { %v1124_v18 = vadd.f32 %v1119_v56, %v870_v52 }
 0x198   : > { %1128 = vst [vmem:[#allocation2 + $0x8] sm:$0xff] %v1124_v18 }
 0x199   : > { %v1133_v19 = vld [vmem:[#allocation2 + $0x10] sm:$0xff]  ;;  %v1134_v20 = vld [vmem:[#allocation2] sm:$0xff]  ;;  %v1135_v22 = vld [vmem:[#allocation2 + $0x18] sm:$0xff] }
 0x19a   : > { %v1137_v23 = vpack.c.bf16 %v1134_v20, %v1133_v19 }
 0x19c   : > { %1139 = vst [vmem:[#allocation9] sm:$0xff] %v1137_v23 }
 0x19f   : > { %v1136_v24 = vld [vmem:[#allocation2 + $0x8] sm:$0xff] }
 0x1a0   : > { %v1138_v25 = vpack.c.bf16 %v1136_v24, %v1135_v22 }
 0x1a2   : > { %1140 = vst [vmem:[#allocation9 + $0x8] sm:$0xff] %v1138_v25 }
 0x1a3 PF: > { %p1827_p3 = scmp.eq.s32.totalorder %s2174_s11, 2  ;;  %s1152_s25 = sshll.u32 %s2494_s3, 4  ;;  %s1153_s25 = int_to_ptr.hbm [resolvable:$true] %s1152_s25 }
 0x1a4   : > { %s2084_s26 = smov [#allocation9]   ;;  %s2085_s15 = smov 128  }
 0x1a5   : > { %s1150_s27 = sshll.u32 %s2084_s26, 4  ;;  %s2086_s28 = smov 8   ;;  %s1151_s27 = int_to_ptr.vmem [resolvable:$true] %s1150_s27 }
 0x1a6   : > { %1810 = dma.vmem_to_hbm [thread:$0]  (%p1827_p3), %s1151_s27, 256, %s1153_s25, [#allocation5], %s2085_s15, %s2085_s15, %s2086_s28  }
 0x1a7   : > { %2052 = dma.done.wait (%p1827_p3), [#allocation5], 256  }
 0x1a8   : > { %2054 = vsyncadd (%p1827_p3), [#allocation5], 4294967040 }
 0x1a9 PF: > { %s18_s17 = sadd.s32 1, %s2077_s17   ;;  %s2501_s12 = smov %s2061_s13 }
 0x1aa   : > { %p15_p4 = scmp.ge.s32.totalorder %s18_s17, 5   ;;  %s2502_s13 = smov %s2065_s14 }
 0x1ab   : > { %s2503_s14 = smov %s2154_s24  ;;  %s2504_s15 = smov %s2073_s16 }
 0x1ac   : > { %s2505_s16 = smov %s2507_s18  ;;  %17 = sbr.rel (!%p15_p4) target bundleno = 6 (0x6), region = 96 }
 0x1b1   :  { %1169 = vsyncpa [#allocation4], 1 }
 0x1b2   :  { %1171 = vsyncpa [#allocation4 + $0x1], 1 }
 0x1b3   :  { %1172 = vsyncpa [#allocation7], 1 }
 0x1b4   :  { %1174 = vsyncpa [#allocation7 + $0x1], 1 }
 0x1b5   :  { %1175 = vsyncpa [#allocation5], 1 }
 0x1b6   :  { %1177 = vsyncpa [#allocation5 + $0x1], 1 }

</bundles_post_ra>
